<compile_context>
chip_gen: v7x
topology: tpu7x:2x2x1
jax: 0.10.0
libtpu: 0.0.40
codegen_flags: <defaults>
</compile_context>

<pallas_src>
import jax
import jax.numpy as jnp
from jax.experimental import pallas as pl
from jax.experimental.pallas import tpu as pltpu


def _round_up(a, b):
    return (a + b - 1) // b * b


def _min_sublane(dtype):
    itemsize = jnp.dtype(dtype).itemsize
    if itemsize >= 4:
        return 8
    if itemsize == 2:
        return 16
    return 32


def _plan(batch, in_features, out_features, compute_dtype):
    """Tile sizes / padded shapes; identical for raw and pre-padded inputs."""
    sub = _min_sublane(compute_dtype)

    # N (lane) tiling: 256-wide tiles feed the 256-wide v6e/v7x MXU; for small O
    # stay at 128 to limit padding waste.
    o_pad = _round_up(out_features, 128)
    tn = 128
    if o_pad >= 256:
        o_pad = _round_up(out_features, 256)
        tn = 256

    # K tiling: biggest power-of-two tile that divides the padded depth (fewer
    # grid steps -> less per-step pipeline overhead, longer DMAs).
    d_pad = _round_up(in_features, 128)
    tk = next(c for c in (1024, 512, 256, 128) if d_pad % c == 0)

    # M tiling: as big as is comfortable -- the whole weight tensor is re-streamed
    # from HBM once per m tile, so bigger tm = less weight HBM traffic.
    if batch >= 512:
        tm = 512
    elif batch >= 256:
        tm = 256
    elif batch >= 128:
        tm = 128
    else:
        tm = _round_up(batch, sub)
    b_pad = _round_up(batch, tm)

    # v7x shards the "parallel" grid axes across 2 TensorCores: try to keep at
    # least 2 tiles over (m, n) so the second core is not idle.
    if (b_pad // tm) * (o_pad // tn) < 2:
        if o_pad // 128 >= 2:
            tn = 128
        elif tm >= 2 * sub:
            tm = _round_up(tm // 2, sub)
            b_pad = _round_up(batch, tm)

    return tm, tn, tk, b_pad, d_pad, o_pad


def prepare_maxout_params(w_lin, b_lin, in_features, out_features, num_units,
                          compute_dtype=jnp.bfloat16):
    """One-time prep: nn.Linear (O*U, D) weights -> lane-dense padded (U, D_pad, O_pad).

    Do this at parameter-load time, NOT per forward call.
    PyTorch column index c = o * num_units + u (from .view(B, O, U)).
    """
    _, _, _, _, d_pad, o_pad = _plan(1, in_features, out_features, compute_dtype)

    w_re = jnp.transpose(
        w_lin.reshape(out_features, num_units, in_features), (1, 2, 0)
    )  # (U, D, O)
    b_re = jnp.transpose(b_lin.reshape(out_features, num_units), (1, 0)).reshape(
        num_units, 1, out_features
    )  # (U, 1, O)

    w_re = jnp.pad(w_re, ((0, 0), (0, d_pad - in_features), (0, o_pad - out_features)))
    b_re = jnp.pad(b_re, ((0, 0), (0, 0), (0, o_pad - out_features)))
    return w_re.astype(compute_dtype), b_re.astype(jnp.float32)


def prepare_maxout_input(x, out_features, compute_dtype=jnp.bfloat16):
    """Pad/cast x to tile boundaries. Hoist this out of the per-forward hot path
    (ideally the producing layer emits this dtype/shape directly)."""
    batch, in_features = x.shape
    _, _, _, b_pad, d_pad, _ = _plan(batch, in_features, out_features, compute_dtype)
    if (b_pad, d_pad) != (batch, in_features):
        x = jnp.pad(x, ((0, b_pad - batch), (0, d_pad - in_features)))
    return x.astype(compute_dtype)


def maxout_kernel(x_ref, w_ref, b_ref, o_ref, acc_ref):
    # x_ref: (tm, tk)  w_ref: (tk, tn)  b_ref: (1, tn)  o_ref: (tm, tn)
    # acc_ref: (num_units, tm, tn) f32 scratch, persistent across grid steps.
    # grid = (m, n, k, u): k reduces over in_features; u (maxout unit) is innermost
    # so the x block (i, k) stays resident across all units (no x re-DMA).
    k = pl.program_id(2)
    u = pl.program_id(3)
    num_k = pl.num_programs(2)

    partial = jnp.dot(x_ref[...], w_ref[...], preferred_element_type=jnp.float32)

    @pl.when(k == 0)
    def _init_acc():
        acc_ref[u] = partial

    @pl.when(k > 0)
    def _accumulate():
        acc_ref[u] = acc_ref[u] + partial

    @pl.when(k == num_k - 1)
    def _finish_unit():
        # Bias added exactly once per unit after the full K reduction; the running
        # max over units is folded directly into the resident output block.
        y = acc_ref[u] + b_ref[...].astype(jnp.float32)

        @pl.when(u == 0)
        def _init_out():
            o_ref[...] = y.astype(o_ref.dtype)

        @pl.when(u > 0)
        def _fold_max():
            o_ref[...] = jnp.maximum(o_ref[...], y.astype(o_ref.dtype))


def maxout_forward(x, w_re, b_re, out_features, num_units, *,
                   batch=None, compute_dtype=jnp.bfloat16, out_dtype=jnp.float32):
    """x: (B, in_features) raw, or the output of prepare_maxout_input (preferred --
    then the pad/cast fallback below is a no-op and nothing extra touches HBM).
    w_re / b_re: output of prepare_maxout_params."""
    if batch is None:
        batch = x.shape[0]
    in_cols = x.shape[1]
    tm, tn, tk, b_pad, d_pad, o_pad = _plan(batch, in_cols, out_features, compute_dtype)
    assert w_re.shape == (num_units, d_pad, o_pad), (w_re.shape, (num_units, d_pad, o_pad))
    assert b_re.shape == (num_units, 1, o_pad)

    if x.shape != (b_pad, d_pad) or x.dtype != jnp.dtype(compute_dtype):
        # Fallback (off the ideal hot path): see prepare_maxout_input().
        x = jnp.pad(x, ((0, b_pad - x.shape[0]), (0, d_pad - x.shape[1])))
        x = x.astype(compute_dtype)

    grid = (b_pad // tm, o_pad // tn, d_pad // tk, num_units)

    elem = jnp.dtype(compute_dtype).itemsize
    out_elem = jnp.dtype(out_dtype).itemsize
    vmem_needed = (2 * (tm * tk + tk * tn) * elem   # double-buffered x / w blocks
                   + 2 * tn * 4                     # bias blocks
                   + 2 * tm * tn * out_elem         # resident output block
                   + num_units * tm * tn * 4)       # per-unit f32 accumulators
    vmem_limit = int(min(48 * 1024 * 1024, max(8 * 1024 * 1024, vmem_needed * 3 // 2)))

    cost = pl.CostEstimate(
        flops=2 * b_pad * d_pad * o_pad * num_units,
        transcendentals=0,
        bytes_accessed=(b_pad * d_pad * elem * (o_pad // tn)               # x per n tile
                        + num_units * d_pad * o_pad * elem * (b_pad // tm)  # w per m tile
                        + num_units * o_pad * 4 * (b_pad // tm)
                        + b_pad * o_pad * out_elem),
    )

    out = pl.pallas_call(
        maxout_kernel,
        out_shape=jax.ShapeDtypeStruct((b_pad, o_pad), out_dtype),
        grid_spec=pltpu.PrefetchScalarGridSpec(
            num_scalar_prefetch=0,
            grid=grid,
            in_specs=[
                # x tile (tm, tk): index constant across n and u -> fetched once per (m, k).
                pl.BlockSpec((tm, tk), lambda i, j, k, u: (i, k)),
                # weight tile: unit dim squeezed -> kernel sees (tk, tn).
                pl.BlockSpec((None, tk, tn), lambda i, j, k, u: (u, k, j)),
                # bias tile: unit dim squeezed -> kernel sees (1, tn).
                pl.BlockSpec((None, 1, tn), lambda i, j, k, u: (u, 0, j)),
            ],
            out_specs=pl.BlockSpec((tm, tn), lambda i, j, k, u: (i, j)),
            scratch_shapes=[
                pltpu.VMEM((num_units, tm, tn), jnp.float32),  # per-unit K accumulators
            ],
        ),
        compiler_params=pltpu.CompilerParams(
            dimension_semantics=("parallel", "parallel", "arbitrary", "arbitrary"),
            vmem_limit_bytes=vmem_limit,
        ),
        cost_estimate=cost,
    )(x, w_re, b_re)

    return out[:batch, :out_features]


if __name__ == "__main__":
    # Small shapes consistent with the module.
    batch = 8
    in_features = 64
    out_features = 32
    num_units = 4

    key = jax.random.PRNGKey(0)
    kx, kw, kb = jax.random.split(key, 3)

    # Deterministic parameter init mimicking nn.Linear (uniform(-1/sqrt(in), 1/sqrt(in))).
    bound = 1.0 / (in_features ** 0.5)
    w_lin = jax.random.uniform(
        kw, (out_features * num_units, in_features), jnp.float32, -bound, bound
    )
    b_lin = jax.random.uniform(
        kb, (out_features * num_units,), jnp.float32, -bound, bound
    )
    x = jax.random.normal(kx, (batch, in_features), jnp.float32)

    # One-time prep, hoisted out of the per-call hot path: bf16 lane-dense weights
    # and padded/cast input.
    w_re, b_re = prepare_maxout_params(w_lin, b_lin, in_features, out_features, num_units)
    x_prep = prepare_maxout_input(x, out_features)

    out = maxout_forward(x_prep, w_re, b_re, out_features, num_units, batch=batch)
    out = jax.block_until_ready(out)

    # Reference with the same bf16 input rounding (bias + accumulation in f32),
    # matching the kernel's bf16-MXU / f32-accumulate numerics.
    x_bf = x.astype(jnp.bfloat16).astype(jnp.float32)
    w_bf = w_lin.astype(jnp.bfloat16).astype(jnp.float32)
    y_ref = jnp.dot(x_bf, w_bf.T, precision=jax.lax.Precision.HIGHEST) + b_lin
    ref = y_ref.reshape(batch, out_features, num_units).max(-1)

    assert out.shape == (batch, out_features)
    max_err = float(jnp.max(jnp.abs(out - ref)))
    assert jnp.allclose(out, ref, atol=1e-3, rtol=1e-3), max_err
    print("KERNEL_OK")
</pallas_src>

<mosaic_0001>
module attributes {stable_mosaic.version = 11 : i64} {
  func.func @maxout_kernel(%arg0: i32, %arg1: i32, %arg2: i32, %arg3: i32, %arg4: memref<16x128xbf16, #tpu.memory_space<vmem>>, %arg5: memref<1x128x128xbf16, #tpu.memory_space<vmem>>, %arg6: memref<1x1x128xf32, #tpu.memory_space<vmem>>, %arg7: memref<16x128xf32, #tpu.memory_space<vmem>>, %arg8: memref<4x16x128xf32, #tpu.memory_space<vmem>>) attributes {dimension_semantics = [#tpu.dimension_semantics<parallel>, #tpu.dimension_semantics<parallel>, #tpu.dimension_semantics<arbitrary>, #tpu.dimension_semantics<arbitrary>], iteration_bounds = array<i64: 1, 1, 1, 4>, scalar_prefetch = 0 : i64, scratch_operands = 1 : i64, tpu.core_type = #tpu.core_type<tc>, window_params = [{transform_indices = @transform_0, window_bounds = array<i64: 16, 128>}, {transform_indices = @transform_1, window_bounds = array<i64: 1, 128, 128>}, {transform_indices = @transform_2, window_bounds = array<i64: 1, 1, 128>}, {transform_indices = @transform_3, window_bounds = array<i64: 16, 128>}]} {
    %c0 = arith.constant 0 : index
    %c0_0 = arith.constant 0 : index
    %0 = vector.load %arg4[%c0, %c0_0] : memref<16x128xbf16, #tpu.memory_space<vmem>>, vector<16x128xbf16>
    %c0_1 = arith.constant 0 : index
    %c0_2 = arith.constant 0 : index
    %c0_3 = arith.constant 0 : index
    %1 = vector.load %arg5[%c0_1, %c0_2, %c0_3] : memref<1x128x128xbf16, #tpu.memory_space<vmem>>, vector<1x128x128xbf16>
    %2 = vector.shape_cast %1 : vector<1x128x128xbf16> to vector<128x128xbf16>
    %cst = arith.constant dense<0.000000e+00> : vector<16x128xf32>
    %3 = tpu.matmul %0, %2, %cst {dimension_numbers = #tpu.dot_dimension_numbers<[1], [0], [0], [1], [0, 0, 1, 1], [], []>} : vector<16x128xbf16>, vector<128x128xbf16>, vector<16x128xf32> -> vector<16x128xf32>
    %c0_i32 = arith.constant 0 : i32
    %4 = arith.cmpi eq, %arg2, %c0_i32 : i32
    %5 = arith.extui %4 : i1 to i32
    %c0_i32_4 = arith.constant 0 : i32
    %6 = arith.cmpi ne, %5, %c0_i32_4 : i32
    scf.if %6 {
      %13 = arith.index_cast %arg3 : i32 to index
      %c0_9 = arith.constant 0 : index
      %c0_10 = arith.constant 0 : index
      %14 = vector.load %arg8[%13, %c0_9, %c0_10] : memref<4x16x128xf32, #tpu.memory_space<vmem>>, vector<1x16x128xf32>
      %15 = vector.shape_cast %14 : vector<1x16x128xf32> to vector<16x128xf32>
      %16 = vector.shape_cast %3 : vector<16x128xf32> to vector<1x16x128xf32>
      tpu.vector_store %arg8[%13, %c0_9, %c0_10], %16 {strides = array<i32>} : memref<4x16x128xf32, #tpu.memory_space<vmem>>, vector<1x16x128xf32>,
    } else {
    }
    %c0_i32_5 = arith.constant 0 : i32
    %7 = arith.cmpi sgt, %arg2, %c0_i32_5 : i32
    %8 = arith.extui %7 : i1 to i32
    %c0_i32_6 = arith.constant 0 : i32
    %9 = arith.cmpi ne, %8, %c0_i32_6 : i32
    scf.if %9 {
      %13 = arith.index_cast %arg3 : i32 to index
      %c0_9 = arith.constant 0 : index
      %c0_10 = arith.constant 0 : index
      %14 = vector.load %arg8[%13, %c0_9, %c0_10] : memref<4x16x128xf32, #tpu.memory_space<vmem>>, vector<1x16x128xf32>
      %15 = vector.shape_cast %14 : vector<1x16x128xf32> to vector<16x128xf32>
      %16 = arith.addf %15, %3 : vector<16x128xf32>
      %17 = arith.index_cast %arg3 : i32 to index
      %c0_11 = arith.constant 0 : index
      %c0_12 = arith.constant 0 : index
      %18 = vector.load %arg8[%17, %c0_11, %c0_12] : memref<4x16x128xf32, #tpu.memory_space<vmem>>, vector<1x16x128xf32>
      %19 = vector.shape_cast %18 : vector<1x16x128xf32> to vector<16x128xf32>
      %20 = vector.shape_cast %16 : vector<16x128xf32> to vector<1x16x128xf32>
      tpu.vector_store %arg8[%17, %c0_11, %c0_12], %20 {strides = array<i32>} : memref<4x16x128xf32, #tpu.memory_space<vmem>>, vector<1x16x128xf32>,
    } else {
    }
    %c0_i32_7 = arith.constant 0 : i32
    %10 = arith.cmpi eq, %arg2, %c0_i32_7 : i32
    %11 = arith.extui %10 : i1 to i32
    %c0_i32_8 = arith.constant 0 : i32
    %12 = arith.cmpi ne, %11, %c0_i32_8 : i32
    scf.if %12 {
      %13 = arith.index_cast %arg3 : i32 to index
      %c0_9 = arith.constant 0 : index
      %c0_10 = arith.constant 0 : index
      %14 = vector.load %arg8[%13, %c0_9, %c0_10] : memref<4x16x128xf32, #tpu.memory_space<vmem>>, vector<1x16x128xf32>
      %15 = vector.shape_cast %14 : vector<1x16x128xf32> to vector<16x128xf32>
      %c0_11 = arith.constant 0 : index
      %c0_12 = arith.constant 0 : index
      %c0_13 = arith.constant 0 : index
      %16 = vector.load %arg6[%c0_11, %c0_12, %c0_13] : memref<1x1x128xf32, #tpu.memory_space<vmem>>, vector<1x1x128xf32>
      %17 = vector.shape_cast %16 : vector<1x1x128xf32> to vector<1x128xf32>
      %18 = vector.broadcast %17 : vector<1x128xf32> to vector<16x128xf32>
      %19 = arith.addf %15, %18 : vector<16x128xf32>
      %c0_i32_14 = arith.constant 0 : i32
      %20 = arith.cmpi eq, %arg3, %c0_i32_14 : i32
      %21 = arith.extui %20 : i1 to i32
      %c0_i32_15 = arith.constant 0 : i32
      %22 = arith.cmpi ne, %21, %c0_i32_15 : i32
      scf.if %22 {
        %c0_18 = arith.constant 0 : index
        %c0_19 = arith.constant 0 : index
        %26 = vector.load %arg7[%c0_18, %c0_19] : memref<16x128xf32, #tpu.memory_space<vmem>>, vector<16x128xf32>
        tpu.vector_store %arg7[%c0_18, %c0_19], %19 {strides = array<i32>} : memref<16x128xf32, #tpu.memory_space<vmem>>, vector<16x128xf32>,
      } else {
      }
      %c0_i32_16 = arith.constant 0 : i32
      %23 = arith.cmpi sgt, %arg3, %c0_i32_16 : i32
      %24 = arith.extui %23 : i1 to i32
      %c0_i32_17 = arith.constant 0 : i32
      %25 = arith.cmpi ne, %24, %c0_i32_17 : i32
      scf.if %25 {
        %c0_18 = arith.constant 0 : index
        %c0_19 = arith.constant 0 : index
        %26 = vector.load %arg7[%c0_18, %c0_19] : memref<16x128xf32, #tpu.memory_space<vmem>>, vector<16x128xf32>
        %27 = arith.maximumf %26, %19 : vector<16x128xf32>
        %c0_20 = arith.constant 0 : index
        %c0_21 = arith.constant 0 : index
        %28 = vector.load %arg7[%c0_20, %c0_21] : memref<16x128xf32, #tpu.memory_space<vmem>>, vector<16x128xf32>
        tpu.vector_store %arg7[%c0_20, %c0_21], %27 {strides = array<i32>} : memref<16x128xf32, #tpu.memory_space<vmem>>, vector<16x128xf32>,
      } else {
      }
    } else {
    }
    return
  }
  func.func @transform_0(%arg0: i32, %arg1: i32, %arg2: i32, %arg3: i32) -> (i32, i32) {
    %c0_i32 = arith.constant 0 : i32
    return %arg0, %arg2 : i32, i32
  }
  func.func @transform_1(%arg0: i32, %arg1: i32, %arg2: i32, %arg3: i32) -> (i32, i32, i32) {
    %c0_i32 = arith.constant 0 : i32
    return %arg3, %arg2, %arg1 : i32, i32, i32
  }
  func.func @transform_2(%arg0: i32, %arg1: i32, %arg2: i32, %arg3: i32) -> (i32, i32, i32) {
    %c0_i32 = arith.constant 0 : i32
    %c0_i32_0 = arith.constant 0 : i32
    return %arg3, %c0_i32, %arg1 : i32, i32, i32
  }
  func.func @transform_3(%arg0: i32, %arg1: i32, %arg2: i32, %arg3: i32) -> (i32, i32) {
    %c0_i32 = arith.constant 0 : i32
    return %arg0, %arg1 : i32, i32
  }
}

</mosaic_0001>

<bundles_post_ra>
// kernel: tpu_custom_call.1
= control target key start
LH: loop header
LB: loop body
LE: loop exit
PB: predicated region body
PF: predicated region fallthrough
CT: control target
= control target key end

     0   :  { %8 = vsyncpa [#allocation4], 0  ;;  %s1073_s0 = inlined_call_operand.hbm [shape: bf16[16,128], index: 0, kind: input, shape index: {}]   ;;  %s1074_s1 = inlined_call_operand.hbm [shape: bf16[4,128,128], index: 1, kind: input, shape index: {}]   ;;  %s1075_s2 = inlined_call_operand.vmem [shape: f32[4,1,128], index: 2, kind: input, shape index: {}]   ;;  %s1076_s3 = inlined_call_operand.hbm [shape: f32[16,128], index: 3, kind: output, shape index: {}]  }
   0x1   :  { %9 = vsyncpa [#allocation7], 0 }
   0x2   :  { %11 = vsyncpa [#allocation7 + $0x1], 0 }
   0x3   :  { %12 = vsyncpa [#allocation5], 0  ;;  %s877_s12 = smov 0   ;;  %s879_s13 = smov 0  }
   0x4   :  { %s881_s14 = smov 0   ;;  %s883_s15 = smov 0  }
   0x5   :  { %s885_s16 = smov 0   ;;  %s887_s17 = smov 0  }
   0x6 LB: > { %s557_s18 = sadd.s32 4294967295, %s846_s17   ;;  %p96_p0 = scmp.ne.s32.totalorder %s830_s13, %s826_s12  ;;  %s846_s17 = sphi %s887_s17, %s18_s17   ;;  %s842_s16 = sphi %s885_s16, %s1094_s16   ;;  %s838_s15 = sphi %s883_s15, %s1093_s15   ;;  %s834_s14 = sphi %s881_s14, %s1092_s14   ;;  %s830_s13 = sphi %s879_s13, %s1091_s13   ;;  %s826_s12 = sphi %s877_s12, %s1090_s12  }
   0x7   : > { %p909_p1 = scmp.eq.s32.totalorder %s557_s18, 0  ;;  %p558_p2 = scmp.ge.s32.totalorder %s846_s17, 1 }
   0x8   : > { %p163_p3 = scmp.lt.s32.totalorder %s846_s17, 5  ;;  %s848_s22 = smov [#allocation3]  }
   0x9   : > { %s1081_s19 = scalar_select %p909_p1, 1, 0 }
   0xa   : > { %p917_p4 = por %p909_p1, %p96_p0  ;;  %p921_p5 = pnand %p558_p2, %p163_p3 }
   0xb   : > { %s179_s23 = sshll.u32 %s848_s22, 4  ;;  %s33_s25 = sadd.s32 1, %s842_s16  ;;  %s180_s23 = int_to_ptr.vmem [resolvable:$true] %s179_s23 }
   0xc   : > { %s1082_s20 = scalar_select %p917_p4, 1, 0 }
   0xd   : > { %s1083_s21 = scalar_select %p921_p5, 1, 0 }
   0xe   : > { %p626_p6 = pneg %p921_p5  ;;  %s704_s28 = scalar_lea.hbm %s1073_s0, 128 }
   0xf   : > { %p705_p8 = scmp.ne.s32.totalorder %s1073_s0, %s704_s28  ;;  %p711_p12 = scmp.lt.u32.totalorder %s704_s28, %s1073_s0 }
  0x10   : > { %p929_p7 = pnand %p626_p6, %p909_p1 }
  0x12   : > { %p706_p9 = pneg %p929_p7 }
  0x14   : > { %p707_p10 = pnand %p706_p9, %p705_p8 }
  0x16   : > { %p708_p11 = pneg %p707_p10 }
  0x18   : > { %p713_p13 = pnand %p711_p12, %p708_p11 }
  0x1a   : > { %716 = shalt.err (!%p713_p13)
}
  0x1b   : > { %s717_s6 = scalar_lea.vmem %s180_s23, 128  ;;  %p725_p6 = scmp.lt.s32.totalorder %s180_s23, %s180_s23 }
  0x1c   : > { %p718_p0 = scmp.ne.s32.totalorder %s180_s23, %s717_s6  ;;  %p726_p4 = scmp.lt.s32.totalorder %s717_s6, %s717_s6 }
  0x1e   : > { %p720_p2 = pnand %p718_p0, %p706_p9  ;;  %p727_p1 = por %p726_p4, %p725_p6 }
  0x20   : > { %p721_p3 = pneg %p720_p2 }
  0x22   : > { %p728_p5 = pnand %p727_p1, %p721_p3 }
  0x24   : > { %731 = shalt.err (!%p728_p5)
}
  0x25   : > { %s849_s7 = smov 64   ;;  %s850_s8 = smov 4  }
  0x26   : > { %629 = dma.hbm_to_vmem [thread:$0]  (!%p929_p7), %s1073_s0, 128, %s180_s23, [#allocation4], %s849_s7, %s849_s7, %s850_s8  }
  0x27   : > { %p34_p1 = scmp.ge.s32.totalorder %s33_s25, 4  ;;  %s83_s11 = sadd.s32 1, %s834_s14 }
  0x28   : > { %p90_p4 = scmp.ne.s32.totalorder %s834_s14, %s830_s13  ;;  %p91_p5 = scmp.eq.s32.totalorder %s846_s17, 0 }
  0x29   : > { %s1096_s25 = smov (%p34_p1, %s33_s25), 0  ;;  %p635_p9 = scmp.lt.s32.totalorder %s846_s17, 4 }
  0x2a   : > { %p92_p8 = por %p91_p5, %p90_p4  ;;  %s76_s12 = ssub.s32 %s842_s16, %s1096_s25 }
  0x2b   : > { %s193_s22 = sand.u32 1, %s834_s14   ;;  %p81_p10 = scmp.eq.s32.totalorder %s76_s12, 0 }
  0x2c   : > { %s561_s24 = sshll.u32 %s193_s22, 6  ;;  %s586_s26 = sshll.u32 %s842_s16, 10 }
  0x2d   : > { %s965_s27 = scalar_select %p81_p10, %s834_s14, %s83_s11  }
  0x2e   : > { %s970_s23 = scalar_lea.hbm %s1074_s1, %s586_s26  ;;  %s197_s30 = scalar_lea.vmem [#allocation6], %s561_s24 }
  0x2f   : > { %s207_s4 = sshll.u32 %s197_s30, 4  ;;  %p972_p7 = pnand %p635_p9, %p92_p8  ;;  %s976_s4 = int_to_ptr.vmem [resolvable:$true] %s207_s4 }
  0x30   : > { %s978_s6 = scalar_lea.sflag [#allocation7], %s193_s22  ;;  %s732_s9 = scalar_lea.hbm %s970_s23, 1024 }
  0x31   : > { %p733_p11 = scmp.ne.s32.totalorder %s970_s23, %s732_s9  ;;  %p734_p12 = pneg %p972_p7 }
  0x32   : > { %s737_s12 = scalar_lea.hbm %s1074_s1, 4096  ;;  %p738_p2 = scmp.lt.u32.totalorder %s970_s23, %s1074_s1 }
  0x33   : > { %p735_p13 = pnand %p734_p12, %p733_p11  ;;  %p739_p3 = scmp.lt.u32.totalorder %s737_s12, %s732_s9 }
  0x34   : > { %p741_p1 = scmp.lt.u32.totalorder %s732_s9, %s970_s23 }
  0x35   : > { %p736_p0 = pneg %p735_p13  ;;  %p740_p6 = por %p739_p3, %p738_p2 }
  0x37   : > { %p742_p4 = por %p741_p1, %p740_p6 }
  0x39   : > { %p743_p5 = pnand %p742_p4, %p736_p0 }
  0x3b   : > { %746 = shalt.err (!%p743_p5)
}
  0x3c   : > { %s747_s22 = scalar_lea.vmem %s976_s4, 1024  ;;  %s851_s28 = smov [#allocation6]  }
  0x3d   : > { %p748_p8 = scmp.ne.s32.totalorder %s976_s4, %s747_s22  ;;  %s752_s29 = sshll.u32 %s851_s28, 4  ;;  %s753_s29 = int_to_ptr.vmem [resolvable:$false] %s752_s29 }
  0x3e   : > { %s754_s30 = scalar_lea.vmem %s753_s29, 2048  ;;  %p755_p11 = scmp.lt.s32.totalorder %s976_s4, %s753_s29 }
  0x3f   : > { %p750_p9 = pnand %p748_p8, %p734_p12  ;;  %p756_p13 = scmp.lt.s32.totalorder %s754_s30, %s747_s22 }
  0x41   : > { %p751_p10 = pneg %p750_p9  ;;  %p757_p2 = por %p756_p13, %p755_p11 }
  0x43   : > { %p758_p3 = pnand %p757_p2, %p751_p10 }
  0x45   : > { %761 = shalt.err (!%p758_p3)
}
  0x46   : > { %633 = dma.hbm_to_vmem [thread:$0]  (!%p972_p7), %s970_s23, 1024, %s976_s4, %s978_s6, %s849_s7, %s849_s7, %s850_s8  }
  0x47   : > { %p1086_p12 = scmp.ne.s32.totalorder %s1083_s21, 0 }
  0x48   : > { %p1087_p0 = scmp.ne.s32.totalorder (!%p1086_p12), %s1081_s19, 0 }
  0x49   : > { %228 = sbr.rel (%p1086_p12) target bundleno = 371 (0x173), region = 32 }
  0x50   : > { %813 = dma.done.wait (%p1087_p0), [#allocation4], 128  }
  0x51   : > { %815 = vsyncadd (%p1087_p0), [#allocation4], 4294967168  ;;  %s234_s9 = sand.u32 1, %s830_s13   ;;  %p1088_p6 = scmp.ne.s32.totalorder %s1082_s20, 0 }
  0x52   : > { %s566_s5 = sshll.u32 %s234_s9, 6  ;;  %s235_s10 = scalar_lea.sflag [#allocation7], %s234_s9 }
  0x53   : > { %s238_s11 = scalar_lea.vmem [#allocation6], %s566_s5 }
  0x54   : > { %817 = dma.done.wait (%p1088_p6), %s235_s10, 1024  }
  0x55   : > { %819 = vsyncadd (%p1088_p6), %s235_s10, 4294966272  ;;  %v852_v0 = vmov 0.0   ;;  %vm853_vm0 = vmmov 0   ;;  %v695_v1 = vld [vmem:[%s238_s11] sm:$0xff]   ;;  %v696_v2 = vld [vmem:[%s238_s11 + $0x8] sm:$0xff]   ;;  %p264_p7 = scmp.lt.s32.totalorder %s838_s15, 3 }
  0x56   : > { %596 = vmatprep.subr.bf16.mxu0 %v852_v0  ;;  %612 = vmatprep.mubr.msk.bf16.mxu0 %vm853_vm0, %v852_v0  ;;  %v697_v3 = vld [vmem:[%s238_s11 + $0x10] sm:$0xff]   ;;  %v698_v4 = vld [vmem:[%s238_s11 + $0x18] sm:$0xff]   ;;  %v699_v5 = vld [vmem:[%s238_s11 + $0x20] sm:$0xff]   ;;  %p580_p1 = scmp.ne.s32.totalorder %s838_s15, 0 }
  0x57   : > { %597 = vmatpush3.bf16.msra.mxu0 %v695_v1  ;;  %v700_v6 = vld [vmem:[%s238_s11 + $0x28] sm:$0xff]   ;;  %v701_v7 = vld [vmem:[%s238_s11 + $0x30] sm:$0xff]   ;;  %v702_v8 = vld [vmem:[%s238_s11 + $0x38] sm:$0xff]   ;;  %s265_s19 = scalar_select %p264_p7, %s838_s15, 3 }
  0x58   : > { %598 = vmatprep.subr.bf16.mxu0 %v852_v0  ;;  %v703_v9 = vld [vmem:[#allocation3] sm:$0xff]  }
  0x59   : > { %s269_s7 = scalar_lea.vmem %s1075_s2, %s265_s19 }
  0x5a   : > { %v579_v10 = vld [vmem:[%s269_s7] ss:$0 sm:$0xff] }
  0x5b   : > { %599 = vmatpush3.bf16.msra.mxu0 %v696_v2 }
  0x5c   : > { %600 = vmatprep.subr.bf16.mxu0 %v852_v0 }
  0x5f   : > { %601 = vmatpush3.bf16.msra.mxu0 %v697_v3 }
  0x60   : > { %602 = vmatprep.subr.bf16.mxu0 %v852_v0 }
  0x63   : > { %603 = vmatpush3.bf16.msra.mxu0 %v698_v4 }
  0x64   : > { %604 = vmatprep.subr.bf16.mxu0 %v852_v0 }
  0x67   : > { %605 = vmatpush3.bf16.msra.mxu0 %v699_v5 }
  0x68   : > { %606 = vmatprep.subr.bf16.mxu0 %v852_v0 }
  0x6b   : > { %607 = vmatpush3.bf16.msra.mxu0 %v700_v6 }
  0x6c   : > { %608 = vmatprep.subr.bf16.mxu0 %v852_v0 }
  0x6f   : > { %609 = vmatpush3.bf16.msra.mxu0 %v701_v7 }
  0x70   : > { %610 = vmatprep.subr.bf16.mxu0 %v852_v0 }
  0x73   : > { %611 = vmatpush3.bf16.msra.mxu0 %v702_v8 }
  0x76   : > { %613 = vmatmul.mubr.bf16.vlgmr.msra.gmra.mrb[0].mxu0 %v703_v9 }
 0x146   : > { %424 = sbr.rel (%p580_p1) target bundleno = 335 (0x14f), region = 56 }
 0x149   : > { %v378_v11 = vpop.f32.mrb[0].mxu0 }
 0x14a   : > { %v419_v12 = vadd.f32 %v579_v10, %v378_v11  ;;  %v614_v13 = vpop.f32.mrb[1].mxu0 }
 0x14b   : > { %v381_v14 = vpop.f32.mrb[2].mxu0 }
 0x14c   : > { %v420_v15 = vadd.f32 %v579_v10, %v381_v14  ;;  %v615_v16 = vpop.f32.mrb[3].mxu0  ;;  %425 = vst [vmem:[#allocation8] sm:$0xff] (!%p580_p1), %v419_v12 }
 0x14e   : > { %426 = vst [vmem:[#allocation8 + $0x8] sm:$0xff] %v420_v15 }
 0x14f PF: > { %p581_p4 = scmp.le.s32.totalorder %s838_s15, 0 }
 0x151   : > { %430 = sbr.rel (%p581_p4) target bundleno = 345 (0x159), region = 60 }
 0x155   : > { %v431_v17 = vld [vmem:[#allocation8] sm:$0xff] (!%p581_p4)  ;;  %v432_v18 = vld [vmem:[#allocation8 + $0x8] sm:$0xff] (!%p581_p4) }
 0x156   : > { %v433_v19 = vmax.f32 (!%p581_p4), %v431_v17, %v419_v12  ;;  %v434_v20 = vmax.f32 (!%p581_p4), %v432_v18, %v420_v15 }
 0x158   : > { %435 = vst [vmem:[#allocation8] sm:$0xff] %v433_v19  ;;  %436 = vst [vmem:[#allocation8 + $0x8] sm:$0xff] %v434_v20 }
 0x159 PF: > { %p1029_p5 = scmp.eq.s32.totalorder %s557_s18, 3  ;;  %s854_s23 = smov [#allocation8]  }
 0x15a   : > { %s447_s4 = sshll.u32 %s854_s23, 4  ;;  %s448_s4 = int_to_ptr.vmem [resolvable:$true] %s447_s4 }
 0x15b   : > { %s762_s6 = scalar_lea.vmem %s448_s4, 256  ;;  %p769_p11 = scmp.lt.s32.totalorder %s448_s4, %s448_s4 }
 0x15c   : > { %p763_p8 = scmp.ne.s32.totalorder %s448_s4, %s762_s6  ;;  %p770_p13 = scmp.lt.s32.totalorder %s762_s6, %s762_s6 }
 0x15e   : > { %p764_p9 = pnand %p763_p8, %p1029_p5  ;;  %p771_p2 = por %p770_p13, %p769_p11 }
 0x160   : > { %p765_p10 = pneg %p764_p9 }
 0x162   : > { %p772_p3 = pnand %p771_p2, %p765_p10 }
 0x164   : > { %775 = shalt.err (!%p772_p3)
}
 0x165   : > { %s776_s18 = scalar_lea.hbm %s1076_s3, 256 }
 0x166   : > { %p777_p12 = scmp.ne.s32.totalorder %s1076_s3, %s776_s18  ;;  %p782_p7 = scmp.lt.u32.totalorder %s776_s18, %s1076_s3 }
 0x168   : > { %p778_p0 = pnand %p777_p12, %p1029_p5 }
 0x16a   : > { %p779_p6 = pneg %p778_p0 }
 0x16c   : > { %p784_p1 = pnand %p782_p7, %p779_p6 }
 0x16e   : > { %787 = shalt.err (!%p784_p1)
}
 0x16f   : > { %s855_s29 = smov 128   ;;  %s856_s30 = smov 8  }
 0x170   : > { %623 = dma.vmem_to_hbm [thread:$0]  (%p1029_p5), %s448_s4, 256, %s1076_s3, [#allocation5], %s855_s29, %s855_s29, %s856_s30  }
 0x171   : > { %821 = dma.done.wait (%p1029_p5), [#allocation5], 256  }
 0x172   : > { %823 = vsyncadd (%p1029_p5), [#allocation5], 4294967040 }
 0x173 PF: > { %s18_s17 = sadd.s32 1, %s846_s17   ;;  %s1090_s12 = smov %s830_s13 }
 0x174   : > { %p15_p4 = scmp.ge.s32.totalorder %s18_s17, 6   ;;  %s1091_s13 = smov %s834_s14 }
 0x175   : > { %s1092_s14 = smov %s965_s27  ;;  %s1093_s15 = smov %s842_s16 }
 0x176   : > { %s1094_s16 = smov %s1096_s25  ;;  %17 = sbr.rel (!%p15_p4) target bundleno = 6 (0x6), region = 102 }
 0x17d   :  { %463 = vsyncpa [#allocation4], 1 }
 0x17e   :  { %465 = vsyncpa [#allocation4 + $0x1], 1 }
 0x17f   :  { %466 = vsyncpa [#allocation7], 1 }
 0x180   :  { %468 = vsyncpa [#allocation7 + $0x1], 1 }
 0x181   :  { %469 = vsyncpa [#allocation5], 1 }
 0x182   :  { %471 = vsyncpa [#allocation5 + $0x1], 1 }

</bundles_post_ra>
